<compile_context>
chip_gen: v7x
topology: tpu7x:2x2x1
jax: 0.10.0
libtpu: 0.0.40
codegen_flags: <defaults>
</compile_context>

<pallas_src>
import functools

import jax
import jax.numpy as jnp
from jax.experimental import pallas as pl
from jax.experimental.pallas import tpu as pltpu

_GN_EPS = 1e-5


def _sa_kernel(x0_ref, x1_ref, p_ref, o_ref, *, inv_hw):
    # x0_ref / x1_ref: (TB, BLKC, HWP)   first / second half channel windows
    # p_ref:           (BLKC, 8) f32     [cw, cb, aw, ab, mask0, mask1, 0, 0]
    #                  mask == 1.0 -> channel-attention row, 0.0 -> spatial row
    # o_ref:           (TB, BLKC, 2*HWP) fused-shuffle output block
    hwp = x0_ref.shape[-1]
    p = p_ref[...]
    cw, cb = p[:, 0:1], p[:, 1:2]
    aw, ab = p[:, 2:3], p[:, 3:4]

    def gate(xh, is_ch):
        x = xh.astype(jnp.float32)
        # Single-pass stats over the (possibly zero-padded) spatial lanes;
        # dividing by the true HW keeps zero padding statistics-neutral.
        mean = jnp.sum(x, axis=-1, keepdims=True) * inv_hw
        ex2 = jnp.sum(x * x, axis=-1, keepdims=True) * inv_hw
        var = jnp.maximum(ex2 - mean * mean, 0.0)
        rstd = jax.lax.rsqrt(var + _GN_EPS)
        is_sp = 1.0 - is_ch
        scale = is_sp * (aw * rstd)
        offset = is_ch * (cw * mean + cb) + is_sp * (ab - aw * mean * rstd)
        # NOTE: sigmoid is evaluated per element for both branches (channel rows
        # have a row-constant argument).  Kernel is mem-bound on v6e/v7x; only
        # on v5e would the EUP slot be worth re-checking in the bundle dump.
        return (x * jax.nn.sigmoid(scale * x + offset)).astype(o_ref.dtype)

    # Two full-height, lane-dense stores (hwp is a multiple of 128).
    o_ref[:, :, 0:hwp] = gate(x0_ref[...], p[:, 4:5])
    o_ref[:, :, hwp:2 * hwp] = gate(x1_ref[...], p[:, 5:6])


def _vmem_capacity_bytes():
    try:
        info = pltpu.get_tpu_info()
        for attr in ("vmem_capacity_bytes", "vmem_size_bytes", "vmem_bytes"):
            v = getattr(info, attr, None)
            if v:
                return int(v)
    except Exception:
        pass
    return 64 * 1024 * 1024  # conservative default: v7x per-TensorCore VMEM


def _pick_tiles(b, g, cg, hwp, itemsize):
    """Choose (TB batch block, TJ group block, vmem_limit_bytes).

    blk_c = TJ*cg is kept sublane-aligned (dtype-aware); per-half block bytes
    grow toward ~8 MiB (128-MiB-VMEM chips) or ~4 MiB (v7x, 64 MiB/core).
    Per-step footprint is ~4x a half (2 input halves + 2-half output), double
    buffered, so the limits below leave headroom.
    """
    vmem = _vmem_capacity_bytes()
    if vmem >= 100 * 1024 * 1024:        # v5e / v6e: 128 MiB VMEM
        target, limit = 8 * 1024 * 1024, 96 * 1024 * 1024
    else:                                # v7x: 64 MiB per TensorCore
        target, limit = 4 * 1024 * 1024, 48 * 1024 * 1024

    sub = max(8, (8 * 4) // itemsize)    # 8 rows/vreg f32, 16 bf16, 32 int8
    divisors = [d for d in range(1, g + 1) if g % d == 0]
    cands = [d for d in divisors if (d * cg) % sub == 0]
    if not cands:                        # fall back to 32-bit sublane alignment
        cands = [d for d in divisors if (d * cg) % 8 == 0]
    if not cands:
        raise NotImplementedError(
            f"sa_layer_forward requires C//2 (= {g * cg}) to be a multiple of "
            "8 so channel blocks stay sublane-aligned.")

    def half_bytes(tb_, tj_):
        return tb_ * tj_ * cg * hwp * itemsize

    tj = cands[0]
    for d in cands:
        if half_bytes(1, d) <= target:
            tj = d
    tb = 1
    for d in range(2, b + 1):
        if b % d == 0 and half_bytes(d, tj) <= target:
            tb = d

    def steps(tb_, tj_):
        return (b // tb_) * (g // tj_)

    # Megacore balance (v7x has 2 TCs sharing the parallel grid): aim for >= 8
    # grid steps and an even count, but never shred blocks below ~512 KiB/half.
    floor = 512 * 1024
    min_steps = min(8, b * (g // cands[0]))
    while steps(tb, tj) < min_steps and half_bytes(tb, tj) > 2 * floor:
        if tb > 1:
            tb = max(d for d in range(1, tb) if b % d == 0)
        else:
            smaller = [d for d in cands if d < tj]
            if not smaller:
                break
            tj = smaller[-1]
    if steps(tb, tj) % 2:
        even_b = [d for d in range(1, tb) if b % d == 0
                  and ((b // d) * (g // tj)) % 2 == 0]
        even_j = [d for d in cands if d < tj
                  and ((b // tb) * (g // d)) % 2 == 0]
        if even_b:
            tb = max(even_b)
        elif even_j:
            tj = max(even_j)

    return tb, tj, limit


def sa_layer_forward(x, params, groups):
    """x: (B, C, H, W).  params: (cweight, cbias, sweight, sbias, gn_w, gn_b),
    each of shape (C // (2*groups),).  Returns the shuffled SA-layer output."""
    b, c, h, w = x.shape
    g = groups
    assert c % (2 * g) == 0, "channel must be divisible by 2*groups"
    cg = c // (2 * g)
    hw = h * w
    hwp = ((hw + 127) // 128) * 128          # lane-dense spatial extent
    dtype = x.dtype
    itemsize = jnp.dtype(dtype).itemsize

    # Per-channel parameter slab (C//2, 8).  GroupNorm affine is folded into
    # the sweight/sbias affine: aw = sw*gn_w, ab = sw*gn_b + sb.
    cw, cb, sw, sb, gw, gb = [jnp.asarray(p, jnp.float32).reshape(cg) for p in params]
    aw, ab = sw * gw, sw * gb + sb
    q = jnp.arange(c // 2)
    w0 = q % (2 * cg)                        # within-group index, first half
    w1 = (c // 2 + q) % (2 * cg)             # second half (differs iff g is odd)
    pidx = w0 % cg                           # identical for both halves
    m0 = (w0 < cg).astype(jnp.float32)       # 1.0 -> channel-attention row
    m1 = (w1 < cg).astype(jnp.float32)
    zeros = jnp.zeros_like(m0)
    slab = jnp.stack([cw[pidx], cb[pidx], aw[pidx], ab[pidx], m0, m1, zeros, zeros],
                     axis=1)                 # (C//2, 8) f32

    tb, tj, vmem_limit = _pick_tiles(b, g, cg, hwp, itemsize)
    blk_c = tj * cg
    off = g // tj                            # channel-block offset of 2nd half
    assert b % tb == 0 and g % tj == 0 and blk_c % 8 == 0, \
        "tile picker produced a non-sublane-aligned channel block"

    x_r = x.reshape(b, c, hw)
    if hwp != hw:
        # Zero-pad spatial lanes to a multiple of 128 so every vector store in
        # the kernel is lane-dense; pad lanes are sliced off after the call.
        x_r = jnp.pad(x_r, ((0, 0), (0, 0), (0, hwp - hw)))

    kernel = functools.partial(_sa_kernel, inv_hw=1.0 / hw)

    out = pl.pallas_call(
        kernel,
        out_shape=jax.ShapeDtypeStruct((b, c // 2, 2 * hwp), dtype),
        grid=(b // tb, g // tj),
        in_specs=[
            pl.BlockSpec((tb, blk_c, hwp), lambda bi, ji: (bi, ji, 0)),
            pl.BlockSpec((tb, blk_c, hwp), lambda bi, ji: (bi, ji + off, 0)),
            pl.BlockSpec((blk_c, 8), lambda bi, ji: (ji, 0)),
        ],
        out_specs=pl.BlockSpec((tb, blk_c, 2 * hwp), lambda bi, ji: (bi, ji, 0)),
        compiler_params=pltpu.CompilerParams(
            dimension_semantics=("parallel", "parallel"),
            vmem_limit_bytes=vmem_limit,
        ),
    )(x_r, x_r, slab)

    # (B, C//2, 2*HW) row-major is exactly channel_shuffle(groups=2) of
    # (B, C, H, W): free reshape when no spatial padding, a slice otherwise.
    if hwp == hw:
        return out.reshape(b, c, h, w)
    return out.reshape(b, c // 2, 2, hwp)[..., :hw].reshape(b, c, h, w)


def sa_layer_reference(x, params, groups):
    """Pure-JAX reference mirroring the PyTorch forward."""
    b, c, h, w = x.shape
    cg = c // (2 * groups)
    cw, cb, sw, sb, gw, gb = [p.reshape(1, cg, 1, 1) for p in params]

    xr = x.reshape(b * groups, 2 * cg, h, w)
    x0, x1 = xr[:, :cg], xr[:, cg:]

    # channel branch
    xn = jnp.mean(x0, axis=(2, 3), keepdims=True)
    xn = cw * xn + cb
    xn = x0 * jax.nn.sigmoid(xn)

    # spatial branch: GroupNorm with num_groups == num_channels == cg
    mu = jnp.mean(x1, axis=(2, 3), keepdims=True)
    var = jnp.mean((x1 - mu) ** 2, axis=(2, 3), keepdims=True)
    xs = (x1 - mu) / jnp.sqrt(var + _GN_EPS) * gw + gb
    xs = sw * xs + sb
    xs = x1 * jax.nn.sigmoid(xs)

    out = jnp.concatenate([xn, xs], axis=1).reshape(b, c, h, w)
    out = out.reshape(b, 2, c // 2, h, w).transpose(0, 2, 1, 3, 4).reshape(b, c, h, w)
    return out


if __name__ == "__main__":
    def make_case(key, b, c, h, w, groups):
        cg = c // (2 * groups)
        ks = jax.random.split(key, 7)
        x = jax.random.normal(ks[0], (b, c, h, w), jnp.float32)
        cweight = 0.5 * jax.random.normal(ks[1], (cg,), jnp.float32)
        cbias = 1.0 + 0.1 * jax.random.normal(ks[2], (cg,), jnp.float32)
        sweight = 0.5 * jax.random.normal(ks[3], (cg,), jnp.float32)
        sbias = 1.0 + 0.1 * jax.random.normal(ks[4], (cg,), jnp.float32)
        gn_weight = 1.0 + 0.1 * jax.random.normal(ks[5], (cg,), jnp.float32)
        gn_bias = 0.1 * jax.random.normal(ks[6], (cg,), jnp.float32)
        return x, (cweight, cbias, sweight, sbias, gn_weight, gn_bias)

    key = jax.random.PRNGKey(0)
    k1, k2 = jax.random.split(key)

    # Case 1: 128-dense spatial dim (no padding path), even group count.
    x, params = make_case(k1, 2, 64, 16, 16, 4)
    out = jax.block_until_ready(sa_layer_forward(x, params, 4))
    ref = sa_layer_reference(x, params, 4)
    assert out.shape == x.shape
    assert jnp.allclose(out, ref, atol=3e-5, rtol=3e-5), "case 1 mismatch vs reference"

    # Case 2: odd group count + non-multiple-of-128 spatial (padding path).
    x2, params2 = make_case(k2, 2, 48, 6, 6, 3)
    out2 = jax.block_until_ready(sa_layer_forward(x2, params2, 3))
    ref2 = sa_layer_reference(x2, params2, 3)
    assert out2.shape == x2.shape
    assert jnp.allclose(out2, ref2, atol=3e-5, rtol=3e-5), "case 2 mismatch vs reference"

    print("KERNEL_OK")
</pallas_src>

<mosaic_0001>
module attributes {stable_mosaic.version = 11 : i64} {
  func.func @_sa_kernel(%arg0: i32, %arg1: i32, %arg2: memref<1x32x256xf32, #tpu.memory_space<vmem>>, %arg3: memref<1x32x256xf32, #tpu.memory_space<vmem>>, %arg4: memref<32x8xf32, #tpu.memory_space<vmem>>, %arg5: memref<1x32x512xf32, #tpu.memory_space<vmem>>) attributes {dimension_semantics = [#tpu.dimension_semantics<parallel>, #tpu.dimension_semantics<parallel>], iteration_bounds = array<i64: 2, 1>, scalar_prefetch = 0 : i64, scratch_operands = 0 : i64, tpu.core_type = #tpu.core_type<tc>, window_params = [{transform_indices = @transform_0, window_bounds = array<i64: 1, 32, 256>}, {transform_indices = @transform_1, window_bounds = array<i64: 1, 32, 256>}, {transform_indices = @transform_2, window_bounds = array<i64: 32, 8>}, {transform_indices = @transform_3, window_bounds = array<i64: 1, 32, 512>}]} {
    %c0 = arith.constant 0 : index
    %c0_0 = arith.constant 0 : index
    %0 = vector.load %arg4[%c0, %c0_0] : memref<32x8xf32, #tpu.memory_space<vmem>>, vector<32x8xf32>
    %1 = vector.extract_strided_slice %0 {offsets = [0, 0], sizes = [32, 1], strides = [1, 1]} : vector<32x8xf32> to vector<32x1xf32>
    %2 = vector.extract_strided_slice %0 {offsets = [0, 1], sizes = [32, 1], strides = [1, 1]} : vector<32x8xf32> to vector<32x1xf32>
    %3 = vector.extract_strided_slice %0 {offsets = [0, 2], sizes = [32, 1], strides = [1, 1]} : vector<32x8xf32> to vector<32x1xf32>
    %4 = vector.extract_strided_slice %0 {offsets = [0, 3], sizes = [32, 1], strides = [1, 1]} : vector<32x8xf32> to vector<32x1xf32>
    %c0_1 = arith.constant 0 : index
    %c0_2 = arith.constant 0 : index
    %c0_3 = arith.constant 0 : index
    %5 = vector.load %arg2[%c0_1, %c0_2, %c0_3] : memref<1x32x256xf32, #tpu.memory_space<vmem>>, vector<1x32x256xf32>
    %6 = vector.extract_strided_slice %0 {offsets = [0, 4], sizes = [32, 1], strides = [1, 1]} : vector<32x8xf32> to vector<32x1xf32>
    %cst = arith.constant dense<0.000000e+00> : vector<1x32xf32>
    %7 = vector.multi_reduction <add>, %5, %cst [2] : vector<1x32x256xf32> to vector<1x32xf32>
    %8 = vector.shape_cast %7 : vector<1x32xf32> to vector<1x32x1xf32>
    %cst_4 = arith.constant 3.906250e-03 : f32
    %9 = vector.broadcast %cst_4 : f32 to vector<1x32x1xf32>
    %10 = arith.mulf %8, %9 : vector<1x32x1xf32>
    %11 = arith.mulf %5, %5 : vector<1x32x256xf32>
    %cst_5 = arith.constant dense<0.000000e+00> : vector<1x32xf32>
    %12 = vector.multi_reduction <add>, %11, %cst_5 [2] : vector<1x32x256xf32> to vector<1x32xf32>
    %13 = vector.shape_cast %12 : vector<1x32xf32> to vector<1x32x1xf32>
    %cst_6 = arith.constant 3.906250e-03 : f32
    %14 = vector.broadcast %cst_6 : f32 to vector<1x32x1xf32>
    %15 = arith.mulf %13, %14 : vector<1x32x1xf32>
    %16 = arith.mulf %10, %10 : vector<1x32x1xf32>
    %17 = arith.subf %15, %16 : vector<1x32x1xf32>
    %cst_7 = arith.constant 0.000000e+00 : f32
    %18 = vector.broadcast %cst_7 : f32 to vector<1x32x1xf32>
    %19 = arith.maximumf %17, %18 : vector<1x32x1xf32>
    %cst_8 = arith.constant 9.99999974E-6 : f32
    %20 = vector.broadcast %cst_8 : f32 to vector<1x32x1xf32>
    %21 = arith.addf %19, %20 : vector<1x32x1xf32>
    %22 = math.rsqrt %21 : vector<1x32x1xf32>
    %cst_9 = arith.constant 1.000000e+00 : f32
    %23 = vector.broadcast %cst_9 : f32 to vector<32x1xf32>
    %24 = arith.subf %23, %6 : vector<32x1xf32>
    %25 = vector.shape_cast %3 : vector<32x1xf32> to vector<1x32x1xf32>
    %26 = arith.mulf %25, %22 : vector<1x32x1xf32>
    %27 = vector.shape_cast %24 : vector<32x1xf32> to vector<1x32x1xf32>
    %28 = arith.mulf %27, %26 : vector<1x32x1xf32>
    %29 = vector.shape_cast %1 : vector<32x1xf32> to vector<1x32x1xf32>
    %30 = arith.mulf %29, %10 : vector<1x32x1xf32>
    %31 = vector.shape_cast %2 : vector<32x1xf32> to vector<1x32x1xf32>
    %32 = arith.addf %30, %31 : vector<1x32x1xf32>
    %33 = vector.shape_cast %6 : vector<32x1xf32> to vector<1x32x1xf32>
    %34 = arith.mulf %33, %32 : vector<1x32x1xf32>
    %35 = vector.shape_cast %3 : vector<32x1xf32> to vector<1x32x1xf32>
    %36 = arith.mulf %35, %10 : vector<1x32x1xf32>
    %37 = arith.mulf %36, %22 : vector<1x32x1xf32>
    %38 = vector.shape_cast %4 : vector<32x1xf32> to vector<1x32x1xf32>
    %39 = arith.subf %38, %37 : vector<1x32x1xf32>
    %40 = vector.shape_cast %24 : vector<32x1xf32> to vector<1x32x1xf32>
    %41 = arith.mulf %40, %39 : vector<1x32x1xf32>
    %42 = arith.addf %34, %41 : vector<1x32x1xf32>
    %43 = vector.broadcast %28 : vector<1x32x1xf32> to vector<1x32x256xf32>
    %44 = arith.mulf %43, %5 : vector<1x32x256xf32>
    %45 = vector.broadcast %42 : vector<1x32x1xf32> to vector<1x32x256xf32>
    %46 = arith.addf %44, %45 : vector<1x32x256xf32>
    %47 = arith.negf %46 : vector<1x32x256xf32>
    %48 = math.exp %47 : vector<1x32x256xf32>
    %cst_10 = arith.constant 1.000000e+00 : f32
    %49 = vector.broadcast %cst_10 : f32 to vector<1x32x256xf32>
    %50 = arith.addf %49, %48 : vector<1x32x256xf32>
    %51 = arith.divf %49, %50 : vector<1x32x256xf32>
    %52 = arith.mulf %5, %51 : vector<1x32x256xf32>
    %c0_11 = arith.constant 0 : index
    %c0_12 = arith.constant 0 : index
    %c0_13 = arith.constant 0 : index
    %53 = vector.load %arg5[%c0_11, %c0_12, %c0_13] : memref<1x32x512xf32, #tpu.memory_space<vmem>>, vector<1x32x256xf32>
    tpu.vector_store %arg5[%c0_11, %c0_12, %c0_13], %52 {strides = array<i32>} : memref<1x32x512xf32, #tpu.memory_space<vmem>>, vector<1x32x256xf32>,
    %c0_14 = arith.constant 0 : index
    %c0_15 = arith.constant 0 : index
    %c0_16 = arith.constant 0 : index
    %54 = vector.load %arg3[%c0_14, %c0_15, %c0_16] : memref<1x32x256xf32, #tpu.memory_space<vmem>>, vector<1x32x256xf32>
    %55 = vector.extract_strided_slice %0 {offsets = [0, 5], sizes = [32, 1], strides = [1, 1]} : vector<32x8xf32> to vector<32x1xf32>
    %cst_17 = arith.constant dense<0.000000e+00> : vector<1x32xf32>
    %56 = vector.multi_reduction <add>, %54, %cst_17 [2] : vector<1x32x256xf32> to vector<1x32xf32>
    %57 = vector.shape_cast %56 : vector<1x32xf32> to vector<1x32x1xf32>
    %cst_18 = arith.constant 3.906250e-03 : f32
    %58 = vector.broadcast %cst_18 : f32 to vector<1x32x1xf32>
    %59 = arith.mulf %57, %58 : vector<1x32x1xf32>
    %60 = arith.mulf %54, %54 : vector<1x32x256xf32>
    %cst_19 = arith.constant dense<0.000000e+00> : vector<1x32xf32>
    %61 = vector.multi_reduction <add>, %60, %cst_19 [2] : vector<1x32x256xf32> to vector<1x32xf32>
    %62 = vector.shape_cast %61 : vector<1x32xf32> to vector<1x32x1xf32>
    %cst_20 = arith.constant 3.906250e-03 : f32
    %63 = vector.broadcast %cst_20 : f32 to vector<1x32x1xf32>
    %64 = arith.mulf %62, %63 : vector<1x32x1xf32>
    %65 = arith.mulf %59, %59 : vector<1x32x1xf32>
    %66 = arith.subf %64, %65 : vector<1x32x1xf32>
    %cst_21 = arith.constant 0.000000e+00 : f32
    %67 = vector.broadcast %cst_21 : f32 to vector<1x32x1xf32>
    %68 = arith.maximumf %66, %67 : vector<1x32x1xf32>
    %cst_22 = arith.constant 9.99999974E-6 : f32
    %69 = vector.broadcast %cst_22 : f32 to vector<1x32x1xf32>
    %70 = arith.addf %68, %69 : vector<1x32x1xf32>
    %71 = math.rsqrt %70 : vector<1x32x1xf32>
    %cst_23 = arith.constant 1.000000e+00 : f32
    %72 = vector.broadcast %cst_23 : f32 to vector<32x1xf32>
    %73 = arith.subf %72, %55 : vector<32x1xf32>
    %74 = vector.shape_cast %3 : vector<32x1xf32> to vector<1x32x1xf32>
    %75 = arith.mulf %74, %71 : vector<1x32x1xf32>
    %76 = vector.shape_cast %73 : vector<32x1xf32> to vector<1x32x1xf32>
    %77 = arith.mulf %76, %75 : vector<1x32x1xf32>
    %78 = vector.shape_cast %1 : vector<32x1xf32> to vector<1x32x1xf32>
    %79 = arith.mulf %78, %59 : vector<1x32x1xf32>
    %80 = vector.shape_cast %2 : vector<32x1xf32> to vector<1x32x1xf32>
    %81 = arith.addf %79, %80 : vector<1x32x1xf32>
    %82 = vector.shape_cast %55 : vector<32x1xf32> to vector<1x32x1xf32>
    %83 = arith.mulf %82, %81 : vector<1x32x1xf32>
    %84 = vector.shape_cast %3 : vector<32x1xf32> to vector<1x32x1xf32>
    %85 = arith.mulf %84, %59 : vector<1x32x1xf32>
    %86 = arith.mulf %85, %71 : vector<1x32x1xf32>
    %87 = vector.shape_cast %4 : vector<32x1xf32> to vector<1x32x1xf32>
    %88 = arith.subf %87, %86 : vector<1x32x1xf32>
    %89 = vector.shape_cast %73 : vector<32x1xf32> to vector<1x32x1xf32>
    %90 = arith.mulf %89, %88 : vector<1x32x1xf32>
    %91 = arith.addf %83, %90 : vector<1x32x1xf32>
    %92 = vector.broadcast %77 : vector<1x32x1xf32> to vector<1x32x256xf32>
    %93 = arith.mulf %92, %54 : vector<1x32x256xf32>
    %94 = vector.broadcast %91 : vector<1x32x1xf32> to vector<1x32x256xf32>
    %95 = arith.addf %93, %94 : vector<1x32x256xf32>
    %96 = arith.negf %95 : vector<1x32x256xf32>
    %97 = math.exp %96 : vector<1x32x256xf32>
    %cst_24 = arith.constant 1.000000e+00 : f32
    %98 = vector.broadcast %cst_24 : f32 to vector<1x32x256xf32>
    %99 = arith.addf %98, %97 : vector<1x32x256xf32>
    %100 = arith.divf %98, %99 : vector<1x32x256xf32>
    %101 = arith.mulf %54, %100 : vector<1x32x256xf32>
    %c0_25 = arith.constant 0 : index
    %c0_26 = arith.constant 0 : index
    %c256 = arith.constant 256 : index
    %102 = vector.load %arg5[%c0_25, %c0_26, %c256] : memref<1x32x512xf32, #tpu.memory_space<vmem>>, vector<1x32x256xf32>
    tpu.vector_store %arg5[%c0_25, %c0_26, %c256], %101 {strides = array<i32>} : memref<1x32x512xf32, #tpu.memory_space<vmem>>, vector<1x32x256xf32>,
    return
  }
  func.func @transform_0(%arg0: i32, %arg1: i32) -> (i32, i32, i32) {
    %c0_i32 = arith.constant 0 : i32
    %c0_i32_0 = arith.constant 0 : i32
    return %arg0, %arg1, %c0_i32 : i32, i32, i32
  }
  func.func @transform_1(%arg0: i32, %arg1: i32) -> (i32, i32, i32) {
    %c1_i32 = arith.constant 1 : i32
    %0 = arith.addi %arg1, %c1_i32 : i32
    %c0_i32 = arith.constant 0 : i32
    %c0_i32_0 = arith.constant 0 : i32
    return %arg0, %0, %c0_i32 : i32, i32, i32
  }
  func.func @transform_2(%arg0: i32, %arg1: i32) -> (i32, i32) {
    %c0_i32 = arith.constant 0 : i32
    %c0_i32_0 = arith.constant 0 : i32
    return %arg1, %c0_i32 : i32, i32
  }
  func.func @transform_3(%arg0: i32, %arg1: i32) -> (i32, i32, i32) {
    %c0_i32 = arith.constant 0 : i32
    %c0_i32_0 = arith.constant 0 : i32
    return %arg0, %arg1, %c0_i32 : i32, i32, i32
  }
}

</mosaic_0001>

<bundles_post_ra>
// kernel: tpu_custom_call.1
= control target key start
LH: loop header
LB: loop body
LE: loop exit
PB: predicated region body
PF: predicated region fallthrough
CT: control target
= control target key end

     0   :  { %8 = vsyncpa [#allocation3], 0  ;;  %s1909_s0 = inlined_call_operand.hbm [shape: f32[2,64,256], index: 0, kind: input, shape index: {}]   ;;  %s1910_s1 = inlined_call_operand.hbm [shape: f32[2,64,256], index: 1, kind: input, shape index: {}]   ;;  %s1911_s2 = inlined_call_operand.vmem [shape: f32[32,8], index: 2, kind: input, shape index: {}]   ;;  %s1912_s3 = inlined_call_operand.hbm [shape: f32[2,32,512], index: 3, kind: output, shape index: {}]  }
   0x1   :  { %10 = vsyncpa [#allocation3 + $0x1], 0 }
   0x2   :  { %11 = vsyncpa [#allocation6], 0 }
   0x3   :  { %13 = vsyncpa [#allocation6 + $0x1], 0 }
   0x4   :  { %14 = vsyncpa [#allocation4], 0 }
   0x5   :  { %16 = vsyncpa [#allocation4 + $0x1], 0  ;;  %s1418_s12 = smov 0   ;;  %s1420_s13 = smov 0  }
   0x6   :  { %s1422_s14 = smov 0   ;;  %s1424_s15 = smov 0  }
   0x7   :  { %s1426_s16 = smov 0   ;;  %s1428_s17 = smov 0  }
   0x8 LB: > { %s1028_s18 = sadd.s32 4294967295, %s1381_s17   ;;  %s1029_s19 = sadd.s32 4294967294, %s1381_s17   ;;  %s1381_s17 = sphi %s1428_s17, %s22_s17   ;;  %s1377_s16 = sphi %s1426_s16, %s1932_s16   ;;  %s1373_s15 = sphi %s1424_s15, %s1931_s15   ;;  %s1369_s14 = sphi %s1422_s14, %s1930_s14   ;;  %s1365_s13 = sphi %s1420_s13, %s1929_s13   ;;  %s1361_s12 = sphi %s1418_s12, %s1928_s12  }
   0x9   : > { %s34_s20 = sadd.s32 1, %s1377_s16  ;;  %s43_s21 = sadd.s32 1, %s1369_s14 }
   0xa   : > { %p36_p0 = scmp.ge.s32.totalorder %s34_s20, 2  ;;  %p50_p1 = scmp.ne.s32.totalorder %s1369_s14, %s1365_s13 }
   0xb   : > { %p51_p2 = scmp.eq.s32.totalorder %s1381_s17, 0  ;;  %p56_p3 = scmp.ne.s32.totalorder %s1365_s13, %s1361_s12 }
   0xc   : > { %s1934_s20 = smov (%p36_p0, %s34_s20), 0  ;;  %p57_p5 = scmp.eq.s32.totalorder %s1028_s18, 0 }
   0xd   : > { %p1459_p4 = por %p51_p2, %p50_p1  ;;  %s38_s23 = ssub.s32 %s1377_s16, %s1934_s20 }
   0xe   : > { %p138_p6 = scmp.eq.s32.totalorder %s1028_s18, 1  ;;  %p41_p7 = scmp.eq.s32.totalorder %s38_s23, 0 }
   0xf   : > { %p1465_p8 = por %p57_p5, %p56_p3  ;;  %p144_p10 = scmp.eq.s32.totalorder %s1029_s19, 1 }
  0x10   : > { %p1469_p9 = por %p138_p6, %p50_p1  ;;  %p1084_p13 = scmp.lt.s32.totalorder %s1381_s17, 2 }
  0x11   : > { %s1917_s24 = scalar_select %p1465_p8, 1, 0 }
  0x12   : > { %s1918_s25 = scalar_select %p1469_p9, 1, 0 }
  0x13   : > { %s1474_s26 = scalar_select %p41_p7, %s1369_s14, %s43_s21  }
  0x14   : > { %p1476_p11 = por %p144_p10, %p56_p3  ;;  %s1483_s28 = sand.u32 1, %s1369_s14  }
  0x15   : > { %s1033_s29 = sshll.u32 %s1483_s28, 6  ;;  %s1064_s30 = sshll.u32 %s1377_s16, 11 }
  0x16   : > { %s1919_s27 = scalar_select %p1476_p11, 1, 0 }
  0x17   : > { %s1492_s6 = scalar_lea.hbm %s1909_s0, %s1064_s30  ;;  %s177_s7 = scalar_lea.vmem [#allocation2], %s1033_s29 }
  0x18   : > { %s187_s8 = sshll.u32 %s177_s7, 4  ;;  %p1500_p0 = pnand %p1084_p13, %p1459_p4  ;;  %s1496_s8 = int_to_ptr.vmem [resolvable:$true] %s187_s8 }
  0x19   : > { %s174_s10 = scalar_lea.sflag [#allocation3], %s1483_s28  ;;  %s1234_s11 = scalar_lea.hbm %s1492_s6, 1024 }
  0x1a   : > { %p1235_p2 = scmp.ne.s32.totalorder %s1492_s6, %s1234_s11  ;;  %p1236_p3 = pneg %p1500_p0 }
  0x1b   : > { %s1239_s21 = scalar_lea.hbm %s1909_s0, 4096  ;;  %p1240_p4 = scmp.lt.u32.totalorder %s1492_s6, %s1909_s0 }
  0x1c   : > { %p1237_p5 = pnand %p1236_p3, %p1235_p2  ;;  %p1241_p7 = scmp.lt.u32.totalorder %s1239_s21, %s1234_s11 }
  0x1d   : > { %p1243_p13 = scmp.lt.u32.totalorder %s1234_s11, %s1492_s6 }
  0x1e   : > { %p1238_p6 = pneg %p1237_p5  ;;  %p1242_p10 = por %p1241_p7, %p1240_p4 }
  0x20   : > { %p1244_p12 = por %p1243_p13, %p1242_p10 }
  0x22   : > { %p1245_p1 = pnand %p1244_p12, %p1238_p6 }
  0x24   : > { %1248 = shalt.err (!%p1245_p1)
}
  0x25   : > { %s1249_s4 = scalar_lea.vmem %s1496_s8, 1024  ;;  %s1383_s5 = smov [#allocation2]  }
  0x26   : > { %p1250_p2 = scmp.ne.s32.totalorder %s1496_s8, %s1249_s4  ;;  %s1254_s7 = sshll.u32 %s1383_s5, 4  ;;  %s1255_s7 = int_to_ptr.vmem [resolvable:$false] %s1254_s7 }
  0x27   : > { %s1256_s18 = scalar_lea.vmem %s1255_s7, 2048  ;;  %p1257_p9 = scmp.lt.s32.totalorder %s1496_s8, %s1255_s7 }
  0x28   : > { %p1252_p5 = pnand %p1250_p2, %p1236_p3  ;;  %p1258_p4 = scmp.lt.s32.totalorder %s1256_s18, %s1249_s4 }
  0x2a   : > { %p1253_p11 = pneg %p1252_p5  ;;  %p1259_p7 = por %p1258_p4, %p1257_p9 }
  0x2c   : > { %p1260_p10 = pnand %p1259_p7, %p1253_p11 }
  0x2e   : > { %1263 = shalt.err (!%p1260_p10)
}
  0x2f   : > { %s1914_s11 = smov 256   ;;  %s1385_s19 = smov 16  }
  0x30   : > { %1076 = dma.hbm_to_vmem [thread:$0]  (!%p1500_p0), %s1492_s6, 1024, %s1496_s8, %s174_s10, %s1914_s11, %s1914_s11, %s1385_s19  }
  0x31   : > { %p220_p9 = scmp.lt.s32.totalorder %s1381_s17, 3  ;;  %s946_s23 = scalar_lea.hbm %s1910_s1, %s1064_s30 }
  0x32   : > { %p1921_p11 = scmp.ge.s32.totalorder %s1381_s17, 1  ;;  %s1548_s5 = scalar_lea.hbm %s946_s23, 1024 }
  0x33   : > { %s201_s7 = scalar_lea.vmem [#allocation5], %s1033_s29  ;;  %s198_s6 = scalar_lea.sflag [#allocation6], %s1483_s28 }
  0x34   : > { %p1544_p12 = pnand %p1921_p11, %p220_p9  ;;  %s212_s18 = sshll.u32 %s201_s7, 4  ;;  %s1552_s18 = int_to_ptr.vmem [resolvable:$true] %s212_s18 }
  0x35   : > { %s1294_s8 = scalar_lea.hbm %s946_s23, 2048  ;;  %s1269_s21 = scalar_lea.hbm %s1910_s1, 4096 }
  0x36   : > { %p1265_p1 = scmp.ne.s32.totalorder %s1548_s5, %s1294_s8  ;;  %p1270_p2 = scmp.lt.u32.totalorder %s1548_s5, %s1910_s1 }
  0x37   : > { %p1271_p5 = scmp.lt.u32.totalorder %s1269_s21, %s1294_s8  ;;  %p1273_p7 = scmp.lt.u32.totalorder %s1294_s8, %s1548_s5 }
  0x38   : > { %p1267_p6 = pnand %p1265_p1, %p1236_p3 }
  0x39   : > { %p1272_p4 = por %p1271_p5, %p1270_p2 }
  0x3a   : > { %p1268_p13 = pneg %p1267_p6 }
  0x3b   : > { %p1274_p10 = por %p1273_p7, %p1272_p4 }
  0x3d   : > { %p1275_p9 = pnand %p1274_p10, %p1268_p13 }
  0x3f   : > { %1278 = shalt.err (!%p1275_p9)
}
  0x40   : > { %s1279_s29 = scalar_lea.vmem %s1552_s18, 1024  ;;  %s1386_s23 = smov [#allocation5]  }
  0x41   : > { %p1280_p11 = scmp.ne.s32.totalorder %s1552_s18, %s1279_s29  ;;  %s1284_s7 = sshll.u32 %s1386_s23, 4  ;;  %s1285_s7 = int_to_ptr.vmem [resolvable:$false] %s1284_s7 }
  0x42   : > { %s1286_s11 = scalar_lea.vmem %s1285_s7, 2048  ;;  %p1287_p8 = scmp.lt.s32.totalorder %s1552_s18, %s1285_s7 }
  0x43   : > { %p1282_p1 = pnand %p1280_p11, %p1236_p3  ;;  %p1288_p2 = scmp.lt.s32.totalorder %s1286_s11, %s1279_s29 }
  0x45   : > { %p1283_p6 = pneg %p1282_p1  ;;  %p1289_p5 = por %p1288_p2, %p1287_p8 }
  0x47   : > { %p1290_p4 = pnand %p1289_p5, %p1283_p6 }
  0x49   : > { %1293 = shalt.err (!%p1290_p4)
}
  0x4a   : > { %s1923_s8 = smov 256   ;;  %224 = sbr.rel (%p1544_p12) target bundleno = 703 (0x2bf), region = 32 }
  0x4b   : > { %1079 = dma.hbm_to_vmem [thread:$0]  (!%p1500_p0), %s1548_s5, 1024, %s1552_s18, %s198_s6, %s1923_s8, %s1923_s8, %s1385_s19  }
  0x4c   : > { %s1585_s30 = sand.u32 (!%p1544_p12), 1, %s1365_s13   ;;  %p1924_p8 = scmp.ne.s32.totalorder (!%p1544_p12), %s1917_s24, 0 }
  0x4d   : > { %s1040_s10 = sshll.u32 (!%p1544_p12), %s1585_s30, 6  ;;  %s227_s21 = scalar_lea.sflag (!%p1544_p12), [#allocation3], %s1585_s30 }
  0x4e   : > { %s230_s9 = scalar_lea.vmem (!%p1544_p12), [#allocation2], %s1040_s10 }
  0x51   : > { %1348 = dma.done.wait (%p1924_p8), %s227_s21, 1024  }
  0x52   : > { %1350 = vsyncadd (%p1924_p8), %s227_s21, 4294966272  ;;  %s236_s28 = scalar_lea.sflag [#allocation6], %s1585_s30  ;;  %s239_s19 = scalar_lea.vmem [#allocation5], %s1040_s10 }
  0x53   : > { %1352 = dma.done.wait (%p1924_p8), %s236_s28, 1024  }
  0x54   : > { %1354 = vsyncadd (%p1924_p8), %s236_s28, 4294966272  ;;  %v1598_v0 = vld [vmem:[%s230_s9 + $0x20] sm:$0xff]  ;;  %v1600_v1 = vld [vmem:[%s230_s9 + $0x28] sm:$0xff]  ;;  %s1387_s5 = smov 127   ;;  %s1388_s11 = smov 1  }
  0x55   : > { %v1602_v2 = vld [vmem:[%s230_s9] sm:$0xff]  ;;  %v300_v3 = vadd.f32 %v1600_v1, %v1598_v0  ;;  %v1606_v4 = vld [vmem:[%s230_s9 + $0x8] sm:$0xff]  ;;  %v1608_v5 = vld [vmem:[%s230_s9 + $0x30] sm:$0xff]  ;;  %v314_v32 = vmul.f32 %v1598_v0, %v1598_v0  ;;  %v315_v33 = vmul.f32 %v1600_v1, %v1600_v1  ;;  %s1389_s8 = smov 4   ;;  %s1391_s10 = smov 5  }
  0x56   : > { %v1610_v6 = vld [vmem:[%s230_s9 + $0x38] sm:$0xff]  ;;  %v294_v7 = vadd.f32 %v1606_v4, %v1602_v2  ;;  %v1614_v8 = vld [vmem:[%s230_s9 + $0x10] sm:$0xff]  ;;  %v1626_v14 = vld [vmem:[%s239_s19] sm:$0xff]  ;;  %v310_v26 = vmul.f32 %v1602_v2, %v1602_v2  ;;  %v311_v27 = vmul.f32 %v1606_v4, %v1606_v4  ;;  %v316_v29 = vmul.f32 %v1608_v5, %v1608_v5  ;;  %s1392_s21 = smov 2   ;;  %s1042_s28 = sshll.u32 %s1585_s30, 7 }
  0x57   : > { %v1616_v9 = vld [vmem:[%s230_s9 + $0x18] sm:$0xff]  ;;  %301 = vadd.xlane.f32.xlu1 %v300_v3  ;;  %v303_v10 = vadd.f32 %v1610_v6, %v1608_v5  ;;  %v1622_v12 = vld [vmem:[%s239_s19 + $0x10] sm:$0xff]  ;;  %v1628_v15 = vld [vmem:[%s239_s19 + $0x8] sm:$0xff]  ;;  %v312_v23 = vmul.f32 %v1614_v8, %v1614_v8  ;;  %v317_v30 = vmul.f32 %v1610_v6, %v1610_v6  ;;  %v324_v37 = vadd.f32 %v315_v33, %v314_v32  ;;  %s1393_s9 = smov 3   ;;  %s1066_s24 = sshll.u32 %s1373_s15, 11 }
  0x58   : > { %295 = vadd.xlane.f32.xlu0 %v294_v7  ;;  %v297_v11 = vadd.f32 %v1616_v9, %v1614_v8  ;;  %v1624_v13 = vld [vmem:[%s239_s19 + $0x18] sm:$0xff]  ;;  %v602_v17 = vadd.f32 %v1628_v15, %v1626_v14  ;;  %v1634_v18 = vld [vmem:[%s239_s19 + $0x30] sm:$0xff]  ;;  %v1638_v20 = vld [vmem:[%s239_s19 + $0x20] sm:$0xff]  ;;  %v313_v24 = vmul.f32 %v1616_v9, %v1616_v9  ;;  %v318_v31 = vadd.f32 %v311_v27, %v310_v26  ;;  %s1854_s6 = scalar_lea.hbm %s1912_s3, %s1066_s24  ;;  %s883_s15 = scalar_lea.sflag [#allocation4], %s1585_s30 }
  0x59   : > { %v605_v16 = vadd.f32 %v1624_v13, %v1622_v12  ;;  %v1636_v19 = vld [vmem:[%s239_s19 + $0x38] sm:$0xff]  ;;  %v1640_v21 = vld [vmem:[%s239_s19 + $0x28] sm:$0xff]  ;;  %v327_v34 = vadd.f32 %v317_v30, %v316_v29  ;;  %v620_v35 = vmul.f32 %v1622_v12, %v1622_v12  ;;  %v621_v36 = vmul.f32 %v1624_v13, %v1624_v13  ;;  %v1687_v49 = vld [vmem:[%s1911_s2 + $0x10] sm:$0xff]  ;;  %s1821_s19 = scalar_lea.vmem [#allocation7], %s1042_s28  ;;  %p1925_p3 = scmp.ne.s32.totalorder %s1918_s25, 0 }
  0x5a   : > { %v611_v22 = vadd.f32 %v1636_v19, %v1634_v18  ;;  %v608_v25 = vadd.f32 %v1640_v21, %v1638_v20  ;;  %v321_v28 = vadd.f32 %v313_v24, %v312_v23  ;;  %v618_v38 = vmul.f32 %v1626_v14, %v1626_v14  ;;  %v1681_v48 = vld [vmem:[%s1911_s2 + $0x8] sm:$0xff]  ;;  %v1692_v50 = vld [vmem:[%s1911_s2] sm:$0xff]  ;;  %v1698_v51 = vld [vmem:[%s1911_s2 + $0x18] sm:$0xff]  ;;  %s899_s4 = sshll.u32 %s1821_s19, 4  ;;  %s1395_s29 = smov [#allocation7]   ;;  %s1856_s4 = int_to_ptr.vmem [resolvable:$true] %s899_s4 }
  0x5b   : > { %304 = vadd.xlane.f32.xlu1 %v303_v10  ;;  %v619_v39 = vmul.f32 %v1628_v15, %v1628_v15  ;;  %v629_v40 = vadd.f32 %v621_v36, %v620_v35  ;;  %v624_v41 = vmul.f32 %v1634_v18, %v1634_v18  ;;  %v625_v42 = vmul.f32 %v1636_v19, %v1636_v19  ;;  %s1295_s22 = scalar_lea.vmem %s1856_s4, 2048  ;;  %s1299_s23 = sshll.u32 %s1395_s29, 4  ;;  %s1300_s23 = int_to_ptr.vmem [resolvable:$false] %s1299_s23 }
  0x5c   : > { %298 = vadd.xlane.f32.xlu0 %v297_v11  ;;  %v622_v44 = vmul.f32 %v1638_v20, %v1638_v20  ;;  %v623_v45 = vmul.f32 %v1640_v21, %v1640_v21  ;;  %p1296_p0 = scmp.ne.s32.totalorder %s1856_s4, %s1295_s22  ;;  %s1301_s7 = scalar_lea.vmem %s1300_s23, 4096 }
  0x5d   : > { %v626_v43 = vadd.f32 %v619_v39, %v618_v38  ;;  %v635_v46 = vadd.f32 %v625_v42, %v624_v41  ;;  %p1302_p7 = scmp.lt.s32.totalorder %s1856_s4, %s1300_s23  ;;  %p1303_p10 = scmp.lt.s32.totalorder %s1301_s7, %s1295_s22 }
  0x5e   : > { %v632_v47 = vadd.f32 %v623_v45, %v622_v44  ;;  %p1297_p12 = pnand %p1296_p0, %p1925_p3 }
  0x5f   : > { %606 = vadd.xlane.f32.xlu1 %v605_v16  ;;  %p1304_p9 = por %p1303_p10, %p1302_p7 }
  0x60   : > { %603 = vadd.xlane.f32.xlu0 %v602_v17  ;;  %p1298_p13 = pneg %p1297_p12 }
  0x62   : > { %p1305_p11 = pnand %p1304_p9, %p1298_p13 }
  0x63   : > { %612 = vadd.xlane.f32.xlu1 %v611_v22 }
  0x64   : > { %609 = vadd.xlane.f32.xlu0 %v608_v25 }
  0x67   : > { %322 = vadd.xlane.f32.xlu1 %v321_v28 }
  0x68   : > { %319 = vadd.xlane.f32.xlu0 %v318_v31 }
  0x6b   : > { %328 = vadd.xlane.f32.xlu1 %v327_v34 }
  0x6c   : > { %325 = vadd.xlane.f32.xlu0 %v324_v37 }
  0x6f   : > { %630 = vadd.xlane.f32.xlu1 %v629_v40 }
  0x70   : > { %627 = vadd.xlane.f32.xlu0 %v626_v43 }
  0x73   : > { %636 = vadd.xlane.f32.xlu1 %v635_v46 }
  0x74   : > { %633 = vadd.xlane.f32.xlu0 %v632_v47 }
  0x84   : > { %392 = vrot.lane.b32.xlu1 %v1681_v48, %s1387_s5 }
  0x88   : > { %394 = vrot.lane.b32.xlu1 %v1687_v49, %s1387_s5 }
  0x8a   : > { %390 = vrot.lane.b32.xlu0 %v1692_v50, %s1387_s5 }
  0x8c   : > { %396 = vrot.lane.b32.xlu1 %v1698_v51, %s1387_s5 }
  0xe4   : > { %v302_v52 = vpop.xlane.xlu1 %301 }
  0xe5   : > { %v296_v53 = vpop.xlane.xlu0 %295  ;;  %v1704_v11 = vmul.f32 0.00390625, %v302_v52 }
  0xe6   : > { %v306_v61 = vmul.f32 0.00390625, %v296_v53 }
  0xe7   : > { %v336_v31 = vmul.f32 %v1704_v11, %v1704_v11 }
  0xe8   : > { %v305_v54 = vpop.xlane.xlu1 %304  ;;  %v334_v16 = vmul.f32 %v306_v61, %v306_v61 }
  0xe9   : > { %v299_v55 = vpop.xlane.xlu0 %298  ;;  %v1702_v63 = vmul.f32 0.00390625, %v305_v54 }
  0xea   : > { %v307_v59 = vmul.f32 0.00390625, %v299_v55 }
  0xeb   : > { %v337_v27 = vmul.f32 %v1702_v63, %v1702_v63 }
  0xec   : > { %v607_v56 = vpop.xlane.xlu1 %606  ;;  %v335_v3 = vmul.f32 %v307_v59, %v307_v59 }
  0xed   : > { %v604_v57 = vpop.xlane.xlu0 %603  ;;  %v1706_v23 = vmul.f32 0.00390625, %v607_v56 }
  0xee   : > { %v1708_v24 = vmul.f32 0.00390625, %v604_v57 }
  0xef   : > { %v643_v36 = vmul.f32 %v1706_v23, %v1706_v23 }
  0xf0   : > { %v613_v58 = vpop.xlane.xlu1 %612  ;;  %v642_v37 = vmul.f32 %v1708_v24, %v1708_v24 }
  0xf1   : > { %v610_v60 = vpop.xlane.xlu0 %609  ;;  %v617_v41 = vmul.f32 0.00390625, %v613_v58 }
  0xf2   : > { %v616_v45 = vmul.f32 0.00390625, %v610_v60 }
  0xf3   : > { %v645_v57 = vmul.f32 %v617_v41, %v617_v41 }
  0xf4   : > { %v323_v62 = vpop.xlane.xlu1 %322 }
  0xf5   : > { %v331_v7 = vmul.f32 0.00390625, %v323_v62  ;;  %v320_v10 = vpop.xlane.xlu0 %319 }
  0xf6   : > { %v330_v17 = vmul.f32 0.00390625, %v320_v10  ;;  %v644_v10 = vmul.f32 %v616_v45, %v616_v45 }
  0xf7   : > { %v339_v22 = vsub.f32 %v331_v7, %v335_v3 }
  0xf8   : > { %v338_v25 = vsub.f32 %v330_v17, %v334_v16  ;;  %v329_v26 = vpop.xlane.xlu1 %328 }
  0xf9   : > { %v343_v28 = vmax.f32 %v339_v22, 0.0  ;;  %v333_v29 = vmul.f32 0.00390625, %v329_v26  ;;  %v326_v30 = vpop.xlane.xlu0 %325 }
  0xfa   : > { %v342_v32 = vmax.f32 %v338_v25, 0.0  ;;  %v332_v33 = vmul.f32 0.00390625, %v326_v30  ;;  %v382_v30 = vmul.f32 %v306_v61, %v1692_v50 }
  0xfb   : > { %v347_v34 = vadd.f32 1e-05, %v343_v28  ;;  %v341_v35 = vsub.f32 %v333_v29, %v337_v27  ;;  %v383_v27 = vmul.f32 %v307_v59, %v1681_v48  ;;  %v384_v59 = vmul.f32 %v1704_v11, %v1687_v49 }
  0xfc   : > { %v346_v38 = vadd.f32 1e-05, %v342_v32  ;;  %v340_v39 = vsub.f32 %v332_v33, %v336_v31  ;;  %v631_v40 = vpop.xlane.xlu1 %630 }
  0xfd   : > { %1154 = vrsqrt.f32 %v347_v34  ;;  %v345_v42 = vmax.f32 %v341_v35, 0.0  ;;  %v639_v43 = vmul.f32 0.00390625, %v631_v40  ;;  %v628_v44 = vpop.xlane.xlu0 %627 }
  0xfe   : > { %1156 = vrsqrt.f32 %v346_v38  ;;  %v344_v46 = vmax.f32 %v340_v39, 0.0  ;;  %v638_v47 = vmul.f32 0.00390625, %v628_v44 }
  0xff   : > { %v349_v52 = vadd.f32 1e-05, %v345_v42  ;;  %v647_v53 = vsub.f32 %v639_v43, %v643_v36  ;;  %v385_v36 = vmul.f32 %v1702_v63, %v1698_v51  ;;  %v687_v42 = vmul.f32 %v1706_v23, %v1681_v48 }
 0x100   : > { %v348_v54 = vadd.f32 1e-05, %v344_v46  ;;  %v646_v55 = vsub.f32 %v638_v47, %v642_v37  ;;  %v637_v56 = vpop.xlane.xlu1 %636  ;;  %v686_v43 = vmul.f32 %v1708_v24, %v1692_v50  ;;  %v689_v47 = vmul.f32 %v617_v41, %v1698_v51 }
 0x101   : > { %1158 = vrsqrt.f32 %v349_v52  ;;  %v651_v62 = vmax.f32 %v647_v53, 0.0  ;;  %v641_v3 = vmul.f32 0.00390625, %v637_v56  ;;  %v634_v7 = vpop.xlane.xlu0 %633  ;;  %v688_v53 = vmul.f32 %v616_v45, %v1687_v49 }
 0x102   : > { %1160 = vrsqrt.f32 %v348_v54  ;;  %v650_v58 = vmax.f32 %v646_v55, 0.0  ;;  %v640_v16 = vmul.f32 0.00390625, %v634_v7  ;;  %v1390_v45 = vmov 4  }
 0x103   : > { %v655_v17 = vadd.f32 1e-05, %v651_v62  ;;  %v649_v22 = vsub.f32 %v641_v3, %v645_v57  ;;  %1147 = vset.pattern.permute.xlu1 %v1390_v45  ;;  %1146 = vset.pattern.permute.xlu0 %v1390_v45 }
 0x104   : > { %v654_v60 = vadd.f32 1e-05, %v650_v58  ;;  %v648_v25 = vsub.f32 %v640_v16, %v644_v10  ;;  %v393_v39 = vpop.permute.xlu1 %392 }
 0x105   : > { %1162 = vrsqrt.f32 %v655_v17  ;;  %v653_v26 = vmax.f32 %v649_v22, 0.0  ;;  %v391_v57 = vpop.permute.xlu0 %390  ;;  %v403_v24 = vadd.f32 %v393_v39, %v383_v27  ;;  %v691_v10 = vadd.f32 %v687_v42, %v393_v39 }
 0x106   : > { %1164 = vrsqrt.f32 %v654_v60  ;;  %v652_v28 = vmax.f32 %v648_v25, 0.0  ;;  %v402_v62 = vadd.f32 %v391_v57, %v382_v30  ;;  %v690_v58 = vadd.f32 %v686_v43, %v391_v57 }
 0x107   : > { %v1155_v29 = vpop.eup %1154  ;;  %v657_v31 = vadd.f32 1e-05, %v653_v26  ;;  %v354_v57 = vsub.f32 1.0, %v1692_v50 }
 0x108   : > { %v1157_v32 = vpop.eup %1156  ;;  %v656_v33 = vadd.f32 1e-05, %v652_v28  ;;  %v427_v34 = vmul.f32 %v1155_v29, %v383_v27  ;;  %v395_v54 = vpop.permute.xlu1 %394  ;;  %v359_v22 = vmul.f32 %v1155_v29, %v1681_v48 }
 0x109   : > { %1166 = vrsqrt.f32 %v657_v31  ;;  %v426_v35 = vmul.f32 %v1157_v32, %v382_v30  ;;  %v404_v7 = vadd.f32 %v395_v54, %v384_v59  ;;  %v692_v17 = vadd.f32 %v688_v53, %v395_v54 }
 0x10a   : > { %1168 = vrsqrt.f32 %v656_v33  ;;  %436 = vrot.lane.b32.xlu1 %v427_v34, %s1388_s11  ;;  %v358_v60 = vmul.f32 %v1157_v32, %v1692_v50 }
 0x10b   : > { %v1159_v37 = vpop.eup %1158  ;;  %434 = vrot.lane.b32.xlu0 %v426_v35, %s1388_s11 }
 0x10c   : > { %v1161_v61 = vpop.eup %1160  ;;  %v429_v38 = vmul.f32 %v1159_v37, %v385_v36  ;;  %v397_v3 = vpop.permute.xlu1 %396  ;;  %v361_v25 = vmul.f32 %v1159_v37, %v1698_v51 }
 0x10d   : > { %v428_v40 = vmul.f32 %v1161_v61, %v384_v59  ;;  %v405_v41 = vadd.f32 %v397_v3, %v385_v36  ;;  %v693_v16 = vadd.f32 %v689_v47, %v397_v3  ;;  %v360_v26 = vmul.f32 %v1161_v61, %v1687_v49 }
 0x10e   : > { %440 = vrot.lane.b32.xlu1 %v429_v38, %s1388_s11 }
 0x10f   : > { %v1163_v63 = vpop.eup %1162  ;;  %438 = vrot.lane.b32.xlu0 %v428_v40, %s1388_s11 }
 0x110   : > { %v1165_v44 = vpop.eup %1164  ;;  %v715_v46 = vmul.f32 %v1163_v63, %v687_v42  ;;  %v663_v27 = vmul.f32 %v1163_v63, %v1681_v48 }
 0x111   : > { %v714_v11 = vmul.f32 %v1165_v44, %v686_v43  ;;  %v662_v28 = vmul.f32 %v1165_v44, %v1692_v50 }
 0x112   : > { %724 = vrot.lane.b32.xlu1 %v715_v46, %s1388_s11 }
 0x113   : > { %v1167_v52 = vpop.eup %1166  ;;  %722 = vrot.lane.b32.xlu0 %v714_v11, %s1388_s11 }
 0x114   : > { %v1169_v23 = vpop.eup %1168  ;;  %v717_v55 = vmul.f32 %v1167_v52, %v689_v47  ;;  %v665_v29 = vmul.f32 %v1167_v52, %v1698_v51 }
 0x115   : > { %v716_v56 = vmul.f32 %v1169_v23, %v688_v53  ;;  %v664_v30 = vmul.f32 %v1169_v23, %v1687_v49 }
 0x116   : > { %728 = vrot.lane.b32.xlu1 %v717_v55, %s1388_s11 }
 0x117   : > { %726 = vrot.lane.b32.xlu0 %v716_v56, %s1388_s11  ;;  %v355_v56 = vsub.f32 1.0, %v1681_v48 }
 0x11a   : > { %412 = vrot.lane.b32.xlu1 %v403_v24, %s1389_s8 }
 0x11b   : > { %410 = vrot.lane.b32.xlu0 %v402_v62, %s1389_s8 }
 0x11e   : > { %416 = vrot.lane.b32.xlu1 %v405_v41, %s1389_s8  ;;  %v1775_v41 = vsub.f32 1.0, %v1698_v51 }
 0x11f   : > { %414 = vrot.lane.b32.xlu0 %v404_v7, %s1389_s8 }
 0x122   : > { %700 = vrot.lane.b32.xlu1 %v691_v10, %s1391_s10  ;;  %v356_v10 = vsub.f32 1.0, %v1687_v49 }
 0x123   : > { %698 = vrot.lane.b32.xlu0 %v690_v58, %s1391_s10 }
 0x126   : > { %704 = vrot.lane.b32.xlu1 %v693_v16, %s1391_s10 }
 0x127   : > { %702 = vrot.lane.b32.xlu0 %v692_v17, %s1391_s10 }
 0x12a   : > { %368 = vrot.lane.b32.xlu1 %v359_v22, %s1392_s21 }
 0x12b   : > { %366 = vrot.lane.b32.xlu0 %v358_v60, %s1392_s21 }
 0x12e   : > { %372 = vrot.lane.b32.xlu1 %v361_v25, %s1392_s21 }
 0x12f   : > { %370 = vrot.lane.b32.xlu0 %v360_v26, %s1392_s21 }
 0x132   : > { %672 = vrot.lane.b32.xlu1 %v663_v27, %s1393_s9 }
 0x133   : > { %670 = vrot.lane.b32.xlu0 %v662_v28, %s1393_s9  ;;  %v1394_v28 = vmov 5  }
 0x136   : > { %676 = vrot.lane.b32.xlu1 %v665_v29, %s1393_s9 }
 0x137   : > { %674 = vrot.lane.b32.xlu0 %v664_v30, %s1393_s9 }
 0x17c   : > { %v437_v31 = vpop.permute.xlu1 %436 }
 0x17d   : > { %v447_v32 = vsub.f32 %v1681_v48, %v437_v31  ;;  %v435_v33 = vpop.permute.xlu0 %434 }
 0x17e   : > { %v446_v34 = vsub.f32 %v1692_v50, %v435_v33 }
 0x17f   : > { %456 = vrot.lane.b32.xlu1 %v447_v32, %s1388_s11 }
 0x180   : > { %454 = vrot.lane.b32.xlu0 %v446_v34, %s1388_s11  ;;  %v441_v35 = vpop.permute.xlu1 %440 }
 0x181   : > { %v449_v36 = vsub.f32 %v1698_v51, %v441_v35  ;;  %v439_v37 = vpop.permute.xlu0 %438 }
 0x182   : > { %v448_v59 = vsub.f32 %v1687_v49, %v439_v37 }
 0x183   : > { %460 = vrot.lane.b32.xlu1 %v449_v36, %s1388_s11 }
 0x184   : > { %458 = vrot.lane.b32.xlu0 %v448_v59, %s1388_s11  ;;  %v725_v61 = vpop.permute.xlu1 %724 }
 0x185   : > { %v735_v38 = vsub.f32 %v1681_v48, %v725_v61  ;;  %v723_v39 = vpop.permute.xlu0 %722 }
 0x186   : > { %v734_v40 = vsub.f32 %v1692_v50, %v723_v39 }
 0x187   : > { %744 = vrot.lane.b32.xlu1 %v735_v38, %s1392_s21 }
 0x188   : > { %742 = vrot.lane.b32.xlu0 %v734_v40, %s1392_s21  ;;  %v729_v42 = vpop.permute.xlu1 %728 }
 0x189   : > { %v737_v63 = vsub.f32 %v1698_v51, %v729_v42  ;;  %v727_v43 = vpop.permute.xlu0 %726 }
 0x18a   : > { %v736_v44 = vsub.f32 %v1687_v49, %v727_v43 }
 0x18b   : > { %748 = vrot.lane.b32.xlu1 %v737_v63, %s1392_s21 }
 0x18c   : > { %746 = vrot.lane.b32.xlu0 %v736_v44, %s1392_s21  ;;  %v413_v46 = vpop.permute.xlu1 %412 }
 0x18d   : > { %v411_v11 = vpop.permute.xlu0 %410  ;;  %v423_v34 = vmul.f32 %v413_v46, %v1681_v48 }
 0x18e   : > { %v422_v37 = vmul.f32 %v411_v11, %v1692_v50 }
 0x190   : > { %v417_v47 = vpop.permute.xlu1 %416 }
 0x191   : > { %v415_v52 = vpop.permute.xlu0 %414  ;;  %v425_v40 = vmul.f32 %v417_v47, %v1698_v51 }
 0x192   : > { %v424_v43 = vmul.f32 %v415_v52, %v1687_v49 }
 0x194   : > { %v701_v53 = vpop.permute.xlu1 %700 }
 0x195   : > { %v699_v54 = vpop.permute.xlu0 %698 }
 0x198   : > { %v1768_v23 = vpop.permute.xlu1 %704 }
 0x199   : > { %v1770_v55 = vpop.permute.xlu0 %702 }
 0x19a   : > { %v712_v52 = vmul.f32 %v1770_v55, %v1687_v49 }
 0x19c   : > { %v369_v24 = vpop.permute.xlu1 %368 }
 0x19d   : > { %v379_v62 = vmul.f32 %v369_v24, %v355_v56  ;;  %v367_v3 = vpop.permute.xlu0 %366 }
 0x19e   : > { %v378_v7 = vmul.f32 %v367_v3, %v354_v57 }
 0x19f   : > { %481 = vperm.xlu1 %1147, %v379_v62   ;;  %v711_v62 = vmul.f32 %v701_v53, %v1681_v48 }
 0x1a0   : > { %476 = vperm.xlu0 %1146, %v378_v7   ;;  %v373_v58 = vpop.permute.xlu1 %372  ;;  %v710_v7 = vmul.f32 %v699_v54, %v1692_v50  ;;  %v713_v50 = vmul.f32 %v1768_v23, %v1698_v51 }
 0x1a1   : > { %v381_v16 = vmul.f32 %v373_v58, %v1775_v41  ;;  %v371_v17 = vpop.permute.xlu0 %370 }
 0x1a2   : > { %v380_v22 = vmul.f32 %v371_v17, %v356_v10 }
 0x1a4   : > { %486 = vperm.xlu1 %1147, %v380_v22   ;;  %491 = vperm.xlu0 %1146, %v381_v16   ;;  %v673_v60 = vpop.permute.xlu1 %672 }
 0x1a5   : > { %v683_v25 = vmul.f32 %v673_v60, %v355_v56  ;;  %v671_v26 = vpop.permute.xlu0 %670 }
 0x1a6   : > { %v682_v27 = vmul.f32 %v671_v26, %v354_v57 }
 0x1a8   : > { %1148 = vset.pattern.permute.xlu1 %v1394_v28  ;;  %1149 = vset.pattern.permute.xlu0 %v1394_v28  ;;  %v677_v31 = vpop.permute.xlu1 %676 }
 0x1a9   : > { %v675_v29 = vpop.permute.xlu0 %674  ;;  %764 = vperm.xlu1 %1148, %v682_v27   ;;  %769 = vperm.xlu0 %1149, %v683_v25   ;;  %v685_v32 = vmul.f32 %v677_v31, %v1775_v41 }
 0x1aa   : > { %v684_v30 = vmul.f32 %v675_v29, %v356_v10 }
 0x1ad   : > { %774 = vperm.xlu1 %1148, %v684_v30   ;;  %1150 = vset.pattern.permute.xlu0 %v1390_v45 }
 0x1b1   : > { %779 = vperm.xlu1 %1148, %v685_v32  }
 0x1b5   : > { %1151 = vset.pattern.permute.xlu1 %v1390_v45 }
 0x1f1   : > { %v457_v33 = vpop.permute.xlu1 %456 }
 0x1f2   : > { %v467_v35 = vmul.f32 %v457_v33, %v355_v56  ;;  %v455_v36 = vpop.permute.xlu0 %454 }
 0x1f3   : > { %v466_v59 = vmul.f32 %v455_v36, %v354_v57 }
 0x1f4   : > { %v471_v61 = vadd.f32 %v467_v35, %v423_v34 }
 0x1f5   : > { %v470_v38 = vadd.f32 %v466_v59, %v422_v37  ;;  %v461_v39 = vpop.permute.xlu1 %460 }
 0x1f6   : > { %v469_v42 = vmul.f32 %v461_v39, %v1775_v41  ;;  %v459_v63 = vpop.permute.xlu0 %458  ;;  %509 = vperm.xlu1 %1151, %v471_v61  }
 0x1f7   : > { %v468_v45 = vmul.f32 %v459_v63, %v356_v10  ;;  %504 = vperm.xlu0 %1150, %v470_v38  }
 0x1f8   : > { %v473_v44 = vadd.f32 %v469_v42, %v425_v40 }
 0x1f9   : > { %v472_v46 = vadd.f32 %v468_v45, %v424_v43  ;;  %v745_v24 = vpop.permute.xlu1 %744 }
 0x1fa   : > { %v755_v11 = vmul.f32 %v745_v24, %v355_v56  ;;  %v743_v3 = vpop.permute.xlu0 %742 }
 0x1fb   : > { %v754_v58 = vmul.f32 %v743_v3, %v354_v57  ;;  %514 = vperm.xlu1 %1151, %v472_v46   ;;  %519 = vperm.xlu0 %1150, %v473_v44  }
 0x1fc   : > { %v759_v47 = vadd.f32 %v755_v11, %v711_v62 }
 0x1fd   : > { %v758_v16 = vadd.f32 %v754_v58, %v710_v7  ;;  %v749_v22 = vpop.permute.xlu1 %748 }
 0x1fe   : > { %v747_v17 = vpop.permute.xlu0 %746  ;;  %v757_v53 = vmul.f32 %v749_v22, %v1775_v41 }
 0x1ff   : > { %v756_v60 = vmul.f32 %v747_v17, %v356_v10  ;;  %1152 = vset.pattern.permute.xlu1 %v1394_v28  ;;  %1153 = vset.pattern.permute.xlu0 %v1394_v28 }
 0x200   : > { %792 = vperm.xlu1 %1152, %v758_v16   ;;  %797 = vperm.xlu0 %1153, %v759_v47   ;;  %v761_v54 = vadd.f32 %v757_v53, %v713_v50 }
 0x201   : > { %v760_v48 = vadd.f32 %v756_v60, %v712_v52 }
 0x204   : > { %802 = vperm.xlu1 %1152, %v760_v48  }
 0x208   : > { %807 = vperm.xlu1 %1152, %v761_v54  }
 0x21e   : > { %v482_v56 = vpop.permute.xlu1 %481 }
 0x21f   : > { %v477_v26 = vpop.permute.xlu0 %476  ;;  %v496_v28 = vmul.f32 %v482_v56, %v1614_v8  ;;  %v497_v41 = vmul.f32 %v482_v56, %v1616_v9 }
 0x220   : > { %v494_v29 = vmul.f32 %v477_v26, %v1602_v2  ;;  %v495_v51 = vmul.f32 %v477_v26, %v1606_v4 }
 0x223   : > { %v487_v57 = vpop.permute.xlu1 %486  ;;  %v492_v55 = vpop.permute.xlu0 %491 }
 0x224   : > { %v498_v35 = vmul.f32 %v487_v57, %v1598_v0  ;;  %v499_v59 = vmul.f32 %v487_v57, %v1600_v1  ;;  %v500_v61 = vmul.f32 %v492_v55, %v1608_v5  ;;  %v501_v40 = vmul.f32 %v492_v55, %v1610_v6 }
 0x228   : > { %v765_v25 = vpop.permute.xlu1 %764  ;;  %v770_v27 = vpop.permute.xlu0 %769 }
 0x229   : > { %v782_v3 = vmul.f32 %v765_v25, %v1626_v14  ;;  %v783_v7 = vmul.f32 %v765_v25, %v1628_v15  ;;  %v784_v58 = vmul.f32 %v770_v27, %v1622_v12  ;;  %v785_v48 = vmul.f32 %v770_v27, %v1624_v13 }
 0x22c   : > { %v1794_v49 = vpop.permute.xlu1 %774 }
 0x230   : > { %v1796_v10 = vpop.permute.xlu1 %779 }
 0x275   : > { %v510_v23 = vpop.permute.xlu1 %509 }
 0x276   : > { %v524_v30 = vadd.f32 %v510_v23, %v496_v28  ;;  %v525_v31 = vadd.f32 %v510_v23, %v497_v41  ;;  %v505_v32 = vpop.permute.xlu0 %504  ;;  %v786_v41 = vmul.f32 %v1794_v49, %v1638_v20 }
 0x277   : > { %v522_v33 = vadd.f32 %v505_v32, %v494_v29  ;;  %v523_v34 = vadd.f32 %v505_v32, %v495_v51 }
 0x278   : > { %v1045_v36 = vmul.f32 -1.442695, %v524_v30  ;;  %v1046_v37 = vmul.f32 -1.442695, %v525_v31 }
 0x279   : > { %v1043_v38 = vmul.f32 -1.442695, %v522_v33  ;;  %v1044_v39 = vmul.f32 -1.442695, %v523_v34  ;;  %v787_v34 = vmul.f32 %v1794_v49, %v1640_v21 }
 0x27a   : > { %1170 = vpow2.f32 %v1045_v36  ;;  %v515_v42 = vpop.permute.xlu1 %514  ;;  %v520_v63 = vpop.permute.xlu0 %519 }
 0x27b   : > { %1172 = vpow2.f32 %v1046_v37  ;;  %v526_v43 = vadd.f32 %v515_v42, %v498_v35  ;;  %v527_v45 = vadd.f32 %v515_v42, %v499_v59  ;;  %v528_v44 = vadd.f32 %v520_v63, %v500_v61 }
 0x27c   : > { %1174 = vpow2.f32 %v1043_v38  ;;  %v529_v46 = vadd.f32 %v520_v63, %v501_v40  ;;  %v788_v59 = vmul.f32 %v1796_v10, %v1634_v18  ;;  %v789_v61 = vmul.f32 %v1796_v10, %v1636_v19 }
 0x27d   : > { %1176 = vpow2.f32 %v1044_v39  ;;  %v1047_v24 = vmul.f32 -1.442695, %v526_v43  ;;  %v1048_v62 = vmul.f32 -1.442695, %v527_v45  ;;  %v1049_v11 = vmul.f32 -1.442695, %v528_v44 }
 0x27e   : > { %v1050_v47 = vmul.f32 -1.442695, %v529_v46 }
 0x27f   : > { %1178 = vpow2.f32 %v1047_v24  ;;  %v793_v16 = vpop.permute.xlu1 %792  ;;  %v798_v17 = vpop.permute.xlu0 %797 }
 0x280   : > { %1180 = vpow2.f32 %v1048_v62  ;;  %v810_v52 = vadd.f32 %v793_v16, %v782_v3  ;;  %v811_v22 = vadd.f32 %v793_v16, %v783_v7  ;;  %v812_v60 = vadd.f32 %v798_v17, %v784_v58 }
 0x281   : > { %1182 = vpow2.f32 %v1049_v11  ;;  %v813_v56 = vadd.f32 %v798_v17, %v785_v48 }
 0x282   : > { %1184 = vpow2.f32 %v1050_v47  ;;  %v1051_v53 = vmul.f32 -1.442695, %v810_v52  ;;  %v1052_v50 = vmul.f32 -1.442695, %v811_v22  ;;  %v1053_v54 = vmul.f32 -1.442695, %v812_v60 }
 0x283   : > { %v803_v25 = vpop.permute.xlu1 %802  ;;  %v1054_v23 = vmul.f32 -1.442695, %v813_v56 }
 0x284   : > { %v1171_v57 = vpop.eup %1170  ;;  %1186 = vpow2.f32 %v1051_v53  ;;  %v814_v31 = vadd.f32 %v803_v25, %v786_v41  ;;  %v815_v42 = vadd.f32 %v803_v25, %v787_v34 }
 0x285   : > { %v1173_v26 = vpop.eup %1172  ;;  %v556_v55 = vadd.f32 1.0, %v1171_v57  ;;  %1188 = vpow2.f32 %v1052_v50 }
 0x286   : > { %v1175_v28 = vpop.eup %1174  ;;  %v557_v29 = vadd.f32 1.0, %v1173_v26  ;;  %1190 = vpow2.f32 %v1053_v54  ;;  %v1055_v63 = vmul.f32 -1.442695, %v814_v31  ;;  %v1056_v10 = vmul.f32 -1.442695, %v815_v42 }
 0x287   : > { %v1177_v51 = vpop.eup %1176  ;;  %1192 = vrcp.f32 %v556_v55  ;;  %v554_v27 = vadd.f32 1.0, %v1175_v28  ;;  %v808_v36 = vpop.permute.xlu1 %807 }
 0x288   : > { %1194 = vrcp.f32 %v557_v29  ;;  %v555_v30 = vadd.f32 1.0, %v1177_v51  ;;  %v816_v43 = vadd.f32 %v808_v36, %v788_v59  ;;  %v817_v44 = vadd.f32 %v808_v36, %v789_v61 }
 0x289   : > { %v1179_v32 = vpop.eup %1178  ;;  %1196 = vrcp.f32 %v554_v27 }
 0x28a   : > { %v1181_v33 = vpop.eup %1180  ;;  %1198 = vrcp.f32 %v555_v30  ;;  %v558_v35 = vadd.f32 1.0, %v1179_v32  ;;  %v1057_v58 = vmul.f32 -1.442695, %v816_v43  ;;  %v1058_v17 = vmul.f32 -1.442695, %v817_v44 }
 0x28b   : > { %v1183_v37 = vpop.eup %1182  ;;  %v559_v38 = vadd.f32 1.0, %v1181_v33  ;;  %1200 = vpow2.f32 %v1054_v23 }
 0x28c   : > { %v1185_v39 = vpop.eup %1184  ;;  %1202 = vrcp.f32 %v558_v35  ;;  %v560_v40 = vadd.f32 1.0, %v1183_v37 }
 0x28d   : > { %1204 = vrcp.f32 %v559_v38  ;;  %v561_v49 = vadd.f32 1.0, %v1185_v39 }
 0x28e   : > { %v1187_v45 = vpop.eup %1186  ;;  %1206 = vrcp.f32 %v560_v40 }
 0x28f   : > { %v1189_v46 = vpop.eup %1188  ;;  %1208 = vrcp.f32 %v561_v49  ;;  %v842_v24 = vadd.f32 1.0, %v1187_v45 }
 0x290   : > { %v1191_v62 = vpop.eup %1190  ;;  %v843_v11 = vadd.f32 1.0, %v1189_v46  ;;  %1210 = vpow2.f32 %v1055_v63 }
 0x291   : > { %v1193_v3 = vpop.eup %1192  ;;  %1212 = vrcp.f32 %v842_v24  ;;  %v844_v7 = vadd.f32 1.0, %v1191_v62 }
 0x292   : > { %v1195_v47 = vpop.eup %1194  ;;  %v580_v16 = vmul.f32 %v1193_v3, %v1614_v8  ;;  %1214 = vrcp.f32 %v843_v11 }
 0x293   : > { %v1197_v52 = vpop.eup %1196  ;;  %v581_v22 = vmul.f32 %v1195_v47, %v1616_v9  ;;  %1216 = vrcp.f32 %v844_v7 }
 0x294   : > { %v1199_v60 = vpop.eup %1198  ;;  %588 = vst [vmem:[%s1821_s19 + $0x20] sm:$0xff] %v580_v16  ;;  %v578_v48 = vmul.f32 %v1197_v52, %v1602_v2  ;;  %1218 = vpow2.f32 %v1056_v10 }
 0x295   : > { %v1201_v53 = vpop.eup %1200  ;;  %589 = vst [vmem:[%s1821_s19 + $0x28] sm:$0xff] %v581_v22  ;;  %v579_v8 = vmul.f32 %v1199_v60, %v1606_v4  ;;  %1220 = vpow2.f32 %v1057_v58 }
 0x296   : > { %v1203_v9 = vpop.eup %1202  ;;  %586 = vst [vmem:[%s1821_s19] sm:$0xff] %v578_v48  ;;  %v845_v50 = vadd.f32 1.0, %v1201_v53  ;;  %1222 = vpow2.f32 %v1058_v17 }
 0x297   : > { %v1205_v54 = vpop.eup %1204  ;;  %587 = vst [vmem:[%s1821_s19 + $0x8] sm:$0xff] %v579_v8  ;;  %v582_v56 = vmul.f32 %v1203_v9, %v1598_v0 }
 0x298   : > { %v1207_v57 = vpop.eup %1206  ;;  %v583_v2 = vmul.f32 %v1205_v54, %v1600_v1  ;;  %1224 = vrcp.f32 %v845_v50 }
 0x299   : > { %v1209_v25 = vpop.eup %1208  ;;  %590 = vst [vmem:[%s1821_s19 + $0x40] sm:$0xff] %v582_v56  ;;  %v584_v4 = vmul.f32 %v1207_v57, %v1608_v5 }
 0x29a   : > { %v1211_v26 = vpop.eup %1210  ;;  %591 = vst [vmem:[%s1821_s19 + $0x48] sm:$0xff] %v583_v2  ;;  %v585_v55 = vmul.f32 %v1209_v25, %v1610_v6 }
 0x29b   : > { %v1213_v28 = vpop.eup %1212  ;;  %592 = vst [vmem:[%s1821_s19 + $0x60] sm:$0xff] %v584_v4  ;;  %v846_v41 = vadd.f32 1.0, %v1211_v26 }
 0x29c   : > { %v1215_v29 = vpop.eup %1214  ;;  %593 = vst [vmem:[%s1821_s19 + $0x68] sm:$0xff] %v585_v55  ;;  %v866_v0 = vmul.f32 %v1213_v28, %v1626_v14 }
 0x29d   : > { %v1217_v1 = vpop.eup %1216  ;;  %v867_v51 = vmul.f32 %v1215_v29, %v1628_v15  ;;  %1226 = vrcp.f32 %v846_v41 }
 0x29e   : > { %v1219_v27 = vpop.eup %1218  ;;  %874 = vst [vmem:[%s1821_s19 + $0x10] sm:$0xff] %v866_v0  ;;  %v868_v5 = vmul.f32 %v1217_v1, %v1622_v12 }
 0x29f   : > { %v1221_v23 = vpop.eup %1220  ;;  %875 = vst [vmem:[%s1821_s19 + $0x18] sm:$0xff] %v867_v51  ;;  %v847_v6 = vadd.f32 1.0, %v1219_v27 }
 0x2a0   : > { %v1223_v30 = vpop.eup %1222  ;;  %876 = vst [vmem:[%s1821_s19 + $0x30] sm:$0xff] %v868_v5  ;;  %v848_v31 = vadd.f32 1.0, %v1221_v23 }
 0x2a1   : > { %1228 = vrcp.f32 %v847_v6  ;;  %v849_v14 = vadd.f32 1.0, %v1223_v30 }
 0x2a2   : > { %v1225_v32 = vpop.eup %1224  ;;  %1230 = vrcp.f32 %v848_v31 }
 0x2a3   : > { %v869_v15 = vmul.f32 %v1225_v32, %v1624_v13  ;;  %1232 = vrcp.f32 %v849_v14 }
 0x2a5   : > { %877 = vst [vmem:[%s1821_s19 + $0x38] sm:$0xff] %v869_v15 }
 0x2a7   : > { %v1227_v12 = vpop.eup %1226 }
 0x2a8   : > { %v870_v33 = vmul.f32 %v1227_v12, %v1638_v20 }
 0x2aa   : > { %878 = vst [vmem:[%s1821_s19 + $0x50] sm:$0xff] %v870_v33 }
 0x2ab   : > { %v1229_v34 = vpop.eup %1228 }
 0x2ac   : > { %v1231_v35 = vpop.eup %1230  ;;  %v871_v36 = vmul.f32 %v1229_v34, %v1640_v21 }
 0x2ad   : > { %v1233_v37 = vpop.eup %1232  ;;  %v872_v59 = vmul.f32 %v1231_v35, %v1634_v18 }
 0x2ae   : > { %879 = vst [vmem:[%s1821_s19 + $0x58] sm:$0xff] %v871_v36  ;;  %v873_v13 = vmul.f32 %v1233_v37, %v1636_v19 }
 0x2af   : > { %880 = vst [vmem:[%s1821_s19 + $0x70] sm:$0xff] %v872_v59 }
 0x2b0   : > { %881 = vst [vmem:[%s1821_s19 + $0x78] sm:$0xff] %v873_v13 }
 0x2b1   : > { %1308 = shalt.err (!%p1305_p11)
}
 0x2b2   : > { %s1309_s11 = scalar_lea.hbm %s1854_s6, 2048  ;;  %s1313_s21 = scalar_lea.hbm %s1912_s3, 4096 }
 0x2b3   : > { %p1310_p1 = scmp.ne.s32.totalorder %s1854_s6, %s1309_s11  ;;  %p1314_p5 = scmp.lt.u32.totalorder %s1854_s6, %s1912_s3 }
 0x2b4   : > { %p1315_p4 = scmp.lt.u32.totalorder %s1313_s21, %s1309_s11  ;;  %p1317_p0 = scmp.lt.u32.totalorder %s1309_s11, %s1854_s6 }
 0x2b5   : > { %p1311_p6 = pnand %p1310_p1, %p1925_p3 }
 0x2b6   : > { %p1316_p8 = por %p1315_p4, %p1314_p5 }
 0x2b7   : > { %p1312_p2 = pneg %p1311_p6 }
 0x2b8   : > { %p1318_p12 = por %p1317_p0, %p1316_p8 }
 0x2ba   : > { %p1319_p13 = pnand %p1318_p12, %p1312_p2 }
 0x2bc   : > { %1322 = shalt.err (!%p1319_p13)
}
 0x2bd   : > { %s1396_s19 = smov 512   ;;  %s1397_s24 = smov 32  }
 0x2be   : > { %1071 = dma.vmem_to_hbm [thread:$0]  (%p1925_p3), %s1856_s4, 2048, %s1854_s6, %s883_s15, %s1396_s19, %s1396_s19, %s1397_s24  }
 0x2bf PF: > { %s914_s5 = sand.u32 1, %s1361_s12   ;;  %p1926_p7 = scmp.ne.s32.totalorder %s1919_s27, 0 }
 0x2c0   : > { %p1927_p10 = scmp.ge.s32.totalorder %s1381_s17, 2  ;;  %s915_s18 = scalar_lea.sflag [#allocation4], %s914_s5 }
 0x2c2   : > { %p1081_p9 = pnand %p1927_p10, %p1926_p7 }
 0x2c4   : > { %1356 = dma.done.wait (!%p1081_p9), %s915_s18, 2048  }
 0x2c5   : > { %1358 = vsyncadd (!%p1081_p9), %s915_s18, 4294965248  ;;  %s22_s17 = sadd.s32 1, %s1381_s17   ;;  %s1928_s12 = smov %s1365_s13 }
 0x2c6   : > { %p19_p11 = scmp.ge.s32.totalorder %s22_s17, 4   ;;  %s1929_s13 = smov %s1369_s14 }
 0x2c7   : > { %s1930_s14 = smov %s1474_s26  ;;  %s1931_s15 = smov %s1377_s16 }
 0x2c8   : > { %s1932_s16 = smov %s1934_s20  ;;  %21 = sbr.rel (!%p19_p11) target bundleno = 8 (0x8), region = 93 }
 0x2cf   :  { %920 = vsyncpa [#allocation3], 1 }
 0x2d0   :  { %922 = vsyncpa [#allocation3 + $0x1], 1 }
 0x2d1   :  { %923 = vsyncpa [#allocation6], 1 }
 0x2d2   :  { %925 = vsyncpa [#allocation6 + $0x1], 1 }
 0x2d3   :  { %926 = vsyncpa [#allocation4], 1 }
 0x2d4   :  { %928 = vsyncpa [#allocation4 + $0x1], 1 }

</bundles_post_ra>
